<compile_context>
chip_gen: v7x
topology: tpu7x:2x2x1
jax: 0.10.0
libtpu: 0.0.40
codegen_flags: <defaults>
</compile_context>

<pallas_src>
import functools

import jax
import jax.numpy as jnp
from jax.experimental import pallas as pl
from jax.experimental.pallas import tpu as pltpu


def _labeled_mse_kernel(eeg_ref, dec_ref, y_ref, sumsq_ref, cnt_ref, *,
                        label_val, num_channels, channels_flat):
    j = pl.program_id(1)

    @pl.when(j == 0)
    def _init():
        sumsq_ref[...] = jnp.zeros_like(sumsq_ref)
        cnt_ref[...] = jnp.zeros_like(cnt_ref)

    tb, T = eeg_ref.shape

    # decsig.sum(1)
    if channels_flat:
        # dec_ref is (tb, C*T); each channel slab is a dense, lane-aligned
        # (tb, T) tile -> the channel sum is pure VPU adds.
        rec = dec_ref[:, 0:T].astype(jnp.float32)
        for c in range(1, num_channels):
            rec = rec + dec_ref[:, c * T:(c + 1) * T].astype(jnp.float32)
    else:
        # Fallback when T is not a multiple of 128: (tb, C, T) block, axis-1 sum.
        rec = jnp.sum(dec_ref[...].astype(jnp.float32), axis=1)

    diff = eeg_ref[...].astype(jnp.float32) - rec                       # (tb, T)
    mask = (y_ref[...].astype(jnp.float32) == jnp.float32(label_val)
            ).astype(jnp.float32)                                       # (tb, T)
    sq = diff * diff * mask

    # Fold (tb, T) -> (8, T) with tile-aligned slices + elementwise adds only;
    # the cross-lane reduction to a scalar is deferred to the JAX wrapper.
    part_sq = sq[0:8, :]
    part_cnt = mask[0:8, :]
    for r in range(1, tb // 8):
        part_sq = part_sq + sq[r * 8:(r + 1) * 8, :]
        part_cnt = part_cnt + mask[r * 8:(r + 1) * 8, :]

    sumsq_ref[...] += part_sq
    cnt_ref[...] += part_cnt


def labeled_mse_loss(eeg, decsig, y, *, label=True, tb=None, n_split=2):
    """eeg: (B, T), decsig: (B, C, T), y: (B, T) holding exact label values."""
    B, T = eeg.shape
    Bd, C, Td = decsig.shape
    assert (Bd, Td) == (B, T) and y.shape == (B, T)
    label_val = float(label)

    channels_flat = (T % 128 == 0)
    dec_in = decsig.reshape(B, C * T) if channels_flat else decsig

    # Leading "parallel" grid axis: lets v7x's two TensorCores split the batch.
    n_split = max(1, min(int(n_split), pl.cdiv(B, 8)))

    # Batch tile: target ~2 MiB of decsig per grid step (amortizes the
    # ~0.35 us per-step pipeline overhead; kernel is HBM-bandwidth bound).
    row_bytes = C * T * decsig.dtype.itemsize
    if tb is None:
        tb = min(pl.cdiv(B, n_split),
                 max(8, (2 * 1024 * 1024) // max(1, row_bytes)))
    tb = max(8, (int(tb) // 8) * 8)

    steps = pl.cdiv(B, n_split * tb)
    Bp = n_split * steps * tb
    if Bp != B:
        pad = Bp - B
        eeg = jnp.pad(eeg, ((0, pad), (0, 0)))
        if channels_flat:
            dec_in = jnp.pad(dec_in, ((0, pad), (0, 0)))
        else:
            dec_in = jnp.pad(dec_in, ((0, pad), (0, 0), (0, 0)))
        # Pad labels with a value that never equals `label`, so padded rows
        # contribute nothing to either the masked sum or the count.
        y = jnp.pad(y, ((0, pad), (0, 0)), constant_values=label_val - 1.0)

    kernel = functools.partial(_labeled_mse_kernel, label_val=label_val,
                               num_channels=C, channels_flat=channels_flat)

    if channels_flat:
        dec_spec = pl.BlockSpec((tb, C * T), lambda i, j: (i * steps + j, 0))
    else:
        dec_spec = pl.BlockSpec((tb, C, T), lambda i, j: (i * steps + j, 0, 0))

    in_block_bytes = (tb * T * eeg.dtype.itemsize
                      + tb * T * y.dtype.itemsize
                      + tb * row_bytes)
    out_bytes = 2 * n_split * 8 * T * 4
    # Double-buffered inputs + resident outputs + intermediate headroom,
    # capped well under v7x's 64 MiB per-TC VMEM.
    vmem_limit = int(min(56 * 1024 * 1024,
                         max(16 * 1024 * 1024,
                             3 * in_block_bytes + out_bytes + (4 << 20))))

    cost = pl.CostEstimate(
        flops=int(Bp) * T * (C + 6),
        transcendentals=0,
        bytes_accessed=int(eeg.size * eeg.dtype.itemsize
                           + y.size * y.dtype.itemsize
                           + dec_in.size * dec_in.dtype.itemsize
                           + out_bytes),
    )

    sumsq, cnt = pl.pallas_call(
        kernel,
        out_shape=(jax.ShapeDtypeStruct((n_split * 8, T), jnp.float32),
                   jax.ShapeDtypeStruct((n_split * 8, T), jnp.float32)),
        grid_spec=pltpu.PrefetchScalarGridSpec(
            num_scalar_prefetch=0,
            grid=(n_split, steps),
            in_specs=[
                pl.BlockSpec((tb, T), lambda i, j: (i * steps + j, 0)),   # eeg
                dec_spec,                                                 # decsig
                pl.BlockSpec((tb, T), lambda i, j: (i * steps + j, 0)),   # y
            ],
            out_specs=(pl.BlockSpec((8, T), lambda i, j: (i, 0)),
                       pl.BlockSpec((8, T), lambda i, j: (i, 0))),
        ),
        compiler_params=pltpu.CompilerParams(
            dimension_semantics=("parallel", "arbitrary"),
            vmem_limit_bytes=vmem_limit),
        cost_estimate=cost,
    )(eeg, dec_in, y)

    # Single cross-lane reduce + divide = MSELoss(reduction='mean') over the
    # selected elements.
    return jnp.sum(sumsq) / jnp.sum(cnt)


def labeled_mse_loss_ref(eeg, decsig, y, *, label=True):
    mask = (y.reshape(-1) == float(label)).astype(jnp.float32)
    e = eeg.reshape(-1)
    r = jnp.sum(decsig, axis=1).reshape(-1)
    d = e - r
    return jnp.sum(d * d * mask) / jnp.sum(mask)


if __name__ == "__main__":
    key = jax.random.PRNGKey(0)
    k1, k2, k3 = jax.random.split(key, 3)

    B, C, T = 16, 4, 256
    eeg = jax.random.normal(k1, (B, T), dtype=jnp.float32)
    decsig = jax.random.normal(k2, (B, C, T), dtype=jnp.float32)
    # Binary label map (exact 0.0 / 1.0 values).
    y = jax.random.bernoulli(k3, p=0.5, shape=(B, T)).astype(jnp.float32)

    loss = jax.block_until_ready(labeled_mse_loss(eeg, decsig, y, label=True))
    ref = labeled_mse_loss_ref(eeg, decsig, y, label=True)
    assert jnp.allclose(loss, ref, rtol=1e-5, atol=1e-5), (loss, ref)

    # Batch not divisible by the tile: exercises the cdiv + padding path.
    B2 = 12
    loss2 = jax.block_until_ready(
        labeled_mse_loss(eeg[:B2], decsig[:B2], y[:B2], label=True))
    ref2 = labeled_mse_loss_ref(eeg[:B2], decsig[:B2], y[:B2], label=True)
    assert jnp.allclose(loss2, ref2, rtol=1e-5, atol=1e-5), (loss2, ref2)

    print("KERNEL_OK")
</pallas_src>

<mosaic_0001>
module attributes {stable_mosaic.version = 11 : i64} {
  func.func @_labeled_mse_kernel(%arg0: i32, %arg1: i32, %arg2: memref<8x256xf32, #tpu.memory_space<vmem>>, %arg3: memref<8x1024xf32, #tpu.memory_space<vmem>>, %arg4: memref<8x256xf32, #tpu.memory_space<vmem>>, %arg5: memref<8x256xf32, #tpu.memory_space<vmem>>, %arg6: memref<8x256xf32, #tpu.memory_space<vmem>>) attributes {dimension_semantics = [#tpu.dimension_semantics<parallel>, #tpu.dimension_semantics<arbitrary>], iteration_bounds = array<i64: 2, 1>, scalar_prefetch = 0 : i64, scratch_operands = 0 : i64, tpu.core_type = #tpu.core_type<tc>, window_params = [{transform_indices = @transform_0, window_bounds = array<i64: 8, 256>}, {transform_indices = @transform_1, window_bounds = array<i64: 8, 1024>}, {transform_indices = @transform_2, window_bounds = array<i64: 8, 256>}, {transform_indices = @transform_3, window_bounds = array<i64: 8, 256>}, {transform_indices = @transform_4, window_bounds = array<i64: 8, 256>}]} {
    %c0_i32 = arith.constant 0 : i32
    %0 = arith.cmpi eq, %arg1, %c0_i32 : i32
    %1 = arith.extui %0 : i1 to i32
    %c0_i32_0 = arith.constant 0 : i32
    %2 = arith.cmpi ne, %1, %c0_i32_0 : i32
    scf.if %2 {
      %cst_17 = arith.constant 0.000000e+00 : f32
      %25 = vector.broadcast %cst_17 : f32 to vector<8x256xf32>
      %c0_18 = arith.constant 0 : index
      %c0_19 = arith.constant 0 : index
      %26 = vector.load %arg5[%c0_18, %c0_19] : memref<8x256xf32, #tpu.memory_space<vmem>>, vector<8x256xf32>
      tpu.vector_store %arg5[%c0_18, %c0_19], %25 {strides = array<i32>} : memref<8x256xf32, #tpu.memory_space<vmem>>, vector<8x256xf32>,
      %cst_20 = arith.constant 0.000000e+00 : f32
      %27 = vector.broadcast %cst_20 : f32 to vector<8x256xf32>
      %c0_21 = arith.constant 0 : index
      %c0_22 = arith.constant 0 : index
      %28 = vector.load %arg6[%c0_21, %c0_22] : memref<8x256xf32, #tpu.memory_space<vmem>>, vector<8x256xf32>
      tpu.vector_store %arg6[%c0_21, %c0_22], %27 {strides = array<i32>} : memref<8x256xf32, #tpu.memory_space<vmem>>, vector<8x256xf32>,
    } else {
    }
    %c0 = arith.constant 0 : index
    %c0_1 = arith.constant 0 : index
    %3 = vector.load %arg3[%c0, %c0_1] : memref<8x1024xf32, #tpu.memory_space<vmem>>, vector<8x256xf32>
    %c0_2 = arith.constant 0 : index
    %c256 = arith.constant 256 : index
    %4 = vector.load %arg3[%c0_2, %c256] : memref<8x1024xf32, #tpu.memory_space<vmem>>, vector<8x256xf32>
    %5 = arith.addf %3, %4 : vector<8x256xf32>
    %c0_3 = arith.constant 0 : index
    %c512 = arith.constant 512 : index
    %6 = vector.load %arg3[%c0_3, %c512] : memref<8x1024xf32, #tpu.memory_space<vmem>>, vector<8x256xf32>
    %7 = arith.addf %5, %6 : vector<8x256xf32>
    %c0_4 = arith.constant 0 : index
    %c768 = arith.constant 768 : index
    %8 = vector.load %arg3[%c0_4, %c768] : memref<8x1024xf32, #tpu.memory_space<vmem>>, vector<8x256xf32>
    %9 = arith.addf %7, %8 : vector<8x256xf32>
    %c0_5 = arith.constant 0 : index
    %c0_6 = arith.constant 0 : index
    %10 = vector.load %arg2[%c0_5, %c0_6] : memref<8x256xf32, #tpu.memory_space<vmem>>, vector<8x256xf32>
    %11 = arith.subf %10, %9 : vector<8x256xf32>
    %c0_7 = arith.constant 0 : index
    %c0_8 = arith.constant 0 : index
    %12 = vector.load %arg4[%c0_7, %c0_8] : memref<8x256xf32, #tpu.memory_space<vmem>>, vector<8x256xf32>
    %cst = arith.constant 1.000000e+00 : f32
    %13 = vector.broadcast %cst : f32 to vector<8x256xf32>
    %14 = arith.cmpf oeq, %12, %13 : vector<8x256xf32>
    %15 = arith.extui %14 : vector<8x256xi1> to vector<8x256xi32>
    %16 = arith.sitofp %15 : vector<8x256xi32> to vector<8x256xf32>
    %17 = arith.mulf %11, %11 : vector<8x256xf32>
    %18 = arith.mulf %17, %16 : vector<8x256xf32>
    %c0_9 = arith.constant 0 : index
    %c0_10 = arith.constant 0 : index
    %19 = vector.load %arg5[%c0_9, %c0_10] : memref<8x256xf32, #tpu.memory_space<vmem>>, vector<8x256xf32>
    %20 = arith.addf %19, %18 : vector<8x256xf32>
    %c0_11 = arith.constant 0 : index
    %c0_12 = arith.constant 0 : index
    %21 = vector.load %arg5[%c0_11, %c0_12] : memref<8x256xf32, #tpu.memory_space<vmem>>, vector<8x256xf32>
    tpu.vector_store %arg5[%c0_11, %c0_12], %20 {strides = array<i32>} : memref<8x256xf32, #tpu.memory_space<vmem>>, vector<8x256xf32>,
    %c0_13 = arith.constant 0 : index
    %c0_14 = arith.constant 0 : index
    %22 = vector.load %arg6[%c0_13, %c0_14] : memref<8x256xf32, #tpu.memory_space<vmem>>, vector<8x256xf32>
    %23 = arith.addf %22, %16 : vector<8x256xf32>
    %c0_15 = arith.constant 0 : index
    %c0_16 = arith.constant 0 : index
    %24 = vector.load %arg6[%c0_15, %c0_16] : memref<8x256xf32, #tpu.memory_space<vmem>>, vector<8x256xf32>
    tpu.vector_store %arg6[%c0_15, %c0_16], %23 {strides = array<i32>} : memref<8x256xf32, #tpu.memory_space<vmem>>, vector<8x256xf32>,
    return
  }
  func.func @transform_0(%arg0: i32, %arg1: i32) -> (i32, i32) {
    %c1_i32 = arith.constant 1 : i32
    %0 = arith.muli %arg0, %c1_i32 : i32
    %1 = arith.addi %0, %arg1 : i32
    %c0_i32 = arith.constant 0 : i32
    %c0_i32_0 = arith.constant 0 : i32
    return %1, %c0_i32 : i32, i32
  }
  func.func @transform_1(%arg0: i32, %arg1: i32) -> (i32, i32) {
    %c1_i32 = arith.constant 1 : i32
    %0 = arith.muli %arg0, %c1_i32 : i32
    %1 = arith.addi %0, %arg1 : i32
    %c0_i32 = arith.constant 0 : i32
    %c0_i32_0 = arith.constant 0 : i32
    return %1, %c0_i32 : i32, i32
  }
  func.func @transform_2(%arg0: i32, %arg1: i32) -> (i32, i32) {
    %c1_i32 = arith.constant 1 : i32
    %0 = arith.muli %arg0, %c1_i32 : i32
    %1 = arith.addi %0, %arg1 : i32
    %c0_i32 = arith.constant 0 : i32
    %c0_i32_0 = arith.constant 0 : i32
    return %1, %c0_i32 : i32, i32
  }
  func.func @transform_3(%arg0: i32, %arg1: i32) -> (i32, i32) {
    %c0_i32 = arith.constant 0 : i32
    %c0_i32_0 = arith.constant 0 : i32
    return %arg0, %c0_i32 : i32, i32
  }
  func.func @transform_4(%arg0: i32, %arg1: i32) -> (i32, i32) {
    %c0_i32 = arith.constant 0 : i32
    %c0_i32_0 = arith.constant 0 : i32
    return %arg0, %c0_i32 : i32, i32
  }
}

</mosaic_0001>

<bundles_post_ra>
// kernel: tpu_custom_call.1
= control target key start
LH: loop header
LB: loop body
LE: loop exit
PB: predicated region body
PF: predicated region fallthrough
CT: control target
= control target key end

     0   :  { %s1213_s0 = inlined_call_operand.hbm [shape: f32[16,256], index: 0, kind: input, shape index: {}]   ;;  %s1214_s1 = inlined_call_operand.hbm [shape: f32[16,1024], index: 1, kind: input, shape index: {}]   ;;  %s1215_s2 = inlined_call_operand.hbm [shape: f32[16,256], index: 2, kind: input, shape index: {}]   ;;  %s1216_s3 = inlined_call_operand.hbm [shape: f32[16,256], index: 3, kind: output, shape index: {0}]   ;;  %s1217_s4 = inlined_call_operand.hbm [shape: f32[16,256], index: 4, kind: output, shape index: {1}]  }
   0x1   :  { %1225 = sst [smem:[#allocation19_spill]] %s1214_s1 }
   0x2   :  { %10 = vsyncpa [#allocation3], 0 }
   0x3   :  { %12 = vsyncpa [#allocation3 + $0x1], 0 }
   0x4   :  { %13 = vsyncpa [#allocation6], 0 }
   0x5   :  { %15 = vsyncpa [#allocation6 + $0x1], 0 }
   0x6   :  { %16 = vsyncpa [#allocation4], 0 }
   0x7   :  { %18 = vsyncpa [#allocation4 + $0x1], 0 }
   0x8   :  { %19 = vsyncpa [#allocation10], 0 }
   0x9   :  { %21 = vsyncpa [#allocation10 + $0x1], 0  ;;  %s915_s15 = smov 0   ;;  %s917_s16 = smov 0  }
   0xa   :  { %s919_s17 = smov 0   ;;  %s921_s18 = smov 0  }
   0xb   :  { %s923_s19 = smov 0   ;;  %s925_s20 = smov 0  }
   0xc LB: > { %1226 = sst [smem:[#allocation15_spill]] %s870_s17  ;;  %s946_s21 = sadd.s32 4294967295, %s882_s20   ;;  %s882_s20 = sphi %s925_s20, %s27_s20   ;;  %s878_s19 = sphi %s923_s19, %s1250_s19   ;;  %s874_s18 = sphi %s921_s18, %s1249_s18   ;;  %s870_s17 = sphi %s919_s17, %s1248_s17   ;;  %s866_s16 = sphi %s917_s16, %s1252_s16   ;;  %s862_s15 = sphi %s915_s15, %s1251_s15  }
   0xd   : > { %1227 = sst [smem:[#allocation16_spill]] %s878_s19  ;;  %s563_s22 = sadd.s32 4294967294, %s882_s20  }
   0xe   : > { %s39_s23 = sadd.s32 1, %s878_s19  ;;  %s48_s24 = sadd.s32 1, %s870_s17 }
   0xf   : > { %p41_p0 = scmp.ge.s32.totalorder %s39_s23, 2  ;;  %p55_p1 = scmp.ne.s32.totalorder %s870_s17, %s866_s16 }
  0x10   : > { %p56_p2 = scmp.eq.s32.totalorder %s882_s20, 0  ;;  %p61_p3 = scmp.ne.s32.totalorder %s866_s16, %s862_s15 }
  0x11   : > { %s1254_s23 = smov (%p41_p0, %s39_s23), 0  ;;  %p62_p5 = scmp.eq.s32.totalorder %s946_s21, 0 }
  0x12   : > { %1228 = sst [smem:[#allocation17_spill]] %s1254_s23  ;;  %p958_p4 = por %p56_p2, %p55_p1 }
  0x13   : > { %s45_s26 = ssub.s32 %s878_s19, %s1254_s23  ;;  %p141_p6 = scmp.eq.s32.totalorder %s946_s21, 1 }
  0x14   : > { %p46_p7 = scmp.eq.s32.totalorder %s45_s26, 0  ;;  %p966_p8 = por %p62_p5, %p61_p3 }
  0x15   : > { %p970_p9 = por %p141_p6, %p55_p1  ;;  %p147_p10 = scmp.eq.s32.totalorder %s563_s22, 1 }
  0x16   : > { %s1230_s27 = scalar_select %p966_p8, 1, 0 }
  0x17   : > { %s1231_s28 = scalar_select %p970_p9, 1, 0 }
  0x18   : > { %s975_s29 = scalar_select %p46_p7, %s870_s17, %s48_s24  }
  0x19   : > { %p977_p11 = por %p147_p10, %p61_p3  ;;  %p623_p13 = scmp.lt.s32.totalorder %s882_s20, 2 }
  0x1a   : > { %1232 = sst [smem:[#allocation18_spill]] %s975_s29  ;;  %s984_s5 = sand.u32 1, %s870_s17  }
  0x1b   : > { %s1233_s30 = scalar_select %p977_p11, 1, 0 }
  0x1c   : > { %s213_s6 = sand.u32 1, %s882_s20   ;;  %s569_s7 = sshll.u32 %s984_s5, 6 }
  0x1d   : > { %p990_p0 = pnand %p623_p13, %p958_p4  ;;  %s592_s9 = sshll.u32 %s878_s19, 10 }
  0x1e   : > { %s1235_s1 = sld [smem:[#allocation19_spill]]  ;;  %s217_s13 = scalar_lea.vmem [#allocation5], %s569_s7 }
  0x1f   : > { %s1234_s8 = scalar_select %p990_p0, 1, 0 }
  0x20   : > { %s226_s14 = sshll.u32 %s217_s13, 4  ;;  %s1004_s22 = scalar_lea.sflag [#allocation6], %s213_s6  ;;  %s1001_s14 = int_to_ptr.vmem [resolvable:$true] %s226_s14 }
  0x21   : > { %p1010_p4 = pneg %p990_p0 }
  0x24   : > { %s998_s12 = scalar_lea.hbm %s1235_s1, %s592_s9  ;;  %s679_s9 = scalar_lea.hbm %s1235_s1, 2048 }
  0x25   : > { %s674_s24 = scalar_lea.hbm %s998_s12, 1024  ;;  %p680_p7 = scmp.lt.u32.totalorder %s998_s12, %s1235_s1 }
  0x26   : > { %p675_p3 = scmp.ne.s32.totalorder %s998_s12, %s674_s24  ;;  %p681_p10 = scmp.lt.u32.totalorder %s679_s9, %s674_s24 }
  0x27   : > { %p683_p12 = scmp.lt.u32.totalorder %s674_s24, %s998_s12 }
  0x28   : > { %p677_p5 = pnand %p1010_p4, %p675_p3  ;;  %p682_p13 = por %p681_p10, %p680_p7 }
  0x2a   : > { %p678_p6 = pneg %p677_p5  ;;  %p684_p1 = por %p683_p12, %p682_p13 }
  0x2c   : > { %p685_p2 = pnand %p684_p1, %p678_p6 }
  0x2e   : > { %688 = shalt.err (!%p685_p2)
}
  0x2f   : > { %s689_s6 = scalar_lea.vmem %s1001_s14, 1024  ;;  %s884_s13 = smov [#allocation5]  }
  0x30   : > { %p690_p3 = scmp.ne.s32.totalorder %s1001_s14, %s689_s6  ;;  %s694_s26 = sshll.u32 %s884_s13, 4  ;;  %s695_s26 = int_to_ptr.vmem [resolvable:$false] %s694_s26 }
  0x31   : > { %s696_s7 = scalar_lea.vmem %s695_s26, 2048  ;;  %p697_p9 = scmp.lt.s32.totalorder %s1001_s14, %s695_s26 }
  0x32   : > { %p692_p5 = pnand %p690_p3, %p1010_p4  ;;  %p698_p8 = scmp.lt.s32.totalorder %s696_s7, %s689_s6 }
  0x34   : > { %p693_p11 = pneg %p692_p5  ;;  %p699_p7 = por %p698_p8, %p697_p9 }
  0x36   : > { %p700_p10 = pnand %p699_p7, %p693_p11 }
  0x38   : > { %703 = shalt.err (!%p700_p10)
}
  0x39   : > { %612 = dma.hbm_to_vmem [thread:$0]  (!%p990_p0), %s998_s12, 1024, %s1001_s14, %s1004_s22  }
  0x3a   : > { %p1237_p12 = scmp.lt.s32.totalorder %s882_s20, 3  ;;  %p1238_p1 = scmp.ge.s32.totalorder %s882_s20, 1 }
  0x3b   : > { %s1223_s9 = sshll.u32 %s984_s5, 4  ;;  %s591_s10 = sshll.u32 %s878_s19, 8 }
  0x3c   : > { %p1038_p2 = pnand %p1238_p1, %p1237_p12  ;;  %s1047_s13 = scalar_lea.hbm %s1213_s0, %s591_s10 }
  0x3d   : > { %s197_s26 = scalar_lea.vmem [#allocation2], %s1223_s9  ;;  %s1056_s1 = scalar_lea.hbm %s1215_s2, %s591_s10 }
  0x3e   : > { %s1239_s24 = scalar_select %p1038_p2, 1, 0 }
  0x3f   : > { %s206_s12 = sshll.u32 %s197_s26, 4  ;;  %s194_s23 = scalar_lea.sflag [#allocation3], %s984_s5  ;;  %s1051_s12 = int_to_ptr.vmem [resolvable:$true] %s206_s12 }
  0x40   : > { %s704_s19 = scalar_lea.hbm %s1047_s13, 256  ;;  %s709_s29 = scalar_lea.hbm %s1213_s0, 512 }
  0x41   : > { %p705_p8 = scmp.ne.s32.totalorder %s1047_s13, %s704_s19  ;;  %p710_p6 = scmp.lt.u32.totalorder %s1047_s13, %s1213_s0 }
  0x42   : > { %p711_p13 = scmp.lt.u32.totalorder %s709_s29, %s704_s19  ;;  %p713_p5 = scmp.lt.u32.totalorder %s704_s19, %s1047_s13 }
  0x43   : > { %p707_p9 = pnand %p705_p8, %p1010_p4 }
  0x44   : > { %p712_p3 = por %p711_p13, %p710_p6 }
  0x45   : > { %p708_p11 = pneg %p707_p9 }
  0x46   : > { %p714_p7 = por %p713_p5, %p712_p3 }
  0x48   : > { %p715_p10 = pnand %p714_p7, %p708_p11 }
  0x4a   : > { %718 = shalt.err (!%p715_p10)
}
  0x4b   : > { %s719_s10 = scalar_lea.vmem %s1051_s12, 256  ;;  %s885_s26 = smov [#allocation2]  }
  0x4c   : > { %p720_p12 = scmp.ne.s32.totalorder %s1051_s12, %s719_s10  ;;  %s724_s14 = sshll.u32 %s885_s26, 4  ;;  %s725_s14 = int_to_ptr.vmem [resolvable:$false] %s724_s14 }
  0x4d   : > { %s726_s17 = scalar_lea.vmem %s725_s14, 512  ;;  %p727_p9 = scmp.lt.s32.totalorder %s1051_s12, %s725_s14 }
  0x4e   : > { %p722_p1 = pnand %p720_p12, %p1010_p4  ;;  %p728_p2 = scmp.lt.s32.totalorder %s726_s17, %s719_s10 }
  0x50   : > { %p723_p8 = pneg %p722_p1  ;;  %p729_p6 = por %p728_p2, %p727_p9 }
  0x52   : > { %p730_p13 = pnand %p729_p6, %p723_p8 }
  0x54   : > { %733 = shalt.err (!%p730_p13)
}
  0x55   : > { %609 = dma.hbm_to_vmem [thread:$0]  (!%p990_p0), %s1047_s13, 256, %s1051_s12, %s194_s23  }
  0x56   : > { %s1240_s19 = sshll.u32 %s984_s5, 4  ;;  %s734_s7 = scalar_lea.hbm %s1056_s1, 256 }
  0x57   : > { %s237_s29 = scalar_lea.vmem [#allocation7], %s1240_s19  ;;  %p735_p11 = scmp.ne.s32.totalorder %s1056_s1, %s734_s7 }
  0x58   : > { %s246_s9 = sshll.u32 %s237_s29, 4  ;;  %s739_s10 = scalar_lea.hbm %s1215_s2, 512  ;;  %s247_s9 = int_to_ptr.vmem [resolvable:$true] %s246_s9 }
  0x59   : > { %p737_p2 = pnand %p735_p11, %p1010_p4  ;;  %p740_p5 = scmp.lt.u32.totalorder %s1056_s1, %s1215_s2 }
  0x5a   : > { %p741_p7 = scmp.lt.u32.totalorder %s739_s10, %s734_s7  ;;  %p743_p12 = scmp.lt.u32.totalorder %s734_s7, %s1056_s1 }
  0x5b   : > { %p738_p3 = pneg %p737_p2 }
  0x5c   : > { %p742_p10 = por %p741_p7, %p740_p5 }
  0x5e   : > { %p744_p1 = por %p743_p12, %p742_p10 }
  0x60   : > { %p745_p8 = pnand %p744_p1, %p738_p3 }
  0x62   : > { %748 = shalt.err (!%p745_p8)
}
  0x63   : > { %s749_s23 = scalar_lea.vmem %s247_s9, 256  ;;  %s886_s5 = smov [#allocation7]  }
  0x64   : > { %p750_p9 = scmp.ne.s32.totalorder %s247_s9, %s749_s23  ;;  %s754_s13 = sshll.u32 %s886_s5, 4  ;;  %s755_s13 = int_to_ptr.vmem [resolvable:$false] %s754_s13 }
  0x65   : > { %s756_s12 = scalar_lea.vmem %s755_s13, 512  ;;  %p757_p11 = scmp.lt.s32.totalorder %s247_s9, %s755_s13 }
  0x66   : > { %p752_p6 = pnand %p750_p9, %p1010_p4  ;;  %p758_p2 = scmp.lt.s32.totalorder %s756_s12, %s749_s23 }
  0x68   : > { %p753_p13 = pneg %p752_p6  ;;  %p759_p0 = por %p758_p2, %p757_p11 }
  0x6a   : > { %p760_p5 = pnand %p759_p0, %p753_p13 }
  0x6c   : > { %763 = shalt.err (!%p760_p5)
}
  0x6d   : > { %p1241_p7 = scmp.ne.s32.totalorder %s1234_s8, 0  ;;  %p1242_p3 = scmp.ne.s32.totalorder %s1239_s24, 0 }
  0x6e   : > { %s1103_s25 = sand.u32 (!%p1242_p3), 1, %s866_s16   ;;  %p1243_p0 = scmp.ne.s32.totalorder (!%p1242_p3), %s1230_s27, 0 }
  0x6f   : > { %615 = dma.hbm_to_vmem [thread:$0]  (!%p1241_p7), %s1056_s1, 256, %s247_s9, %s1004_s22  }
  0x70   : > { %255 = sbr.rel (%p1242_p3) target bundleno = 173 (0xad), region = 32  ;;  %s1106_s17 = sshll.u32 (!%p1242_p3), %s1103_s25, 4 }
  0x71   : > { %s258_s19 = scalar_lea.sflag (!%p1242_p3), [#allocation3], %s1103_s25  ;;  %s261_s29 = scalar_lea.vmem (!%p1242_p3), [#allocation2], %s1106_s17 }
  0x77   : > { %845 = dma.done.wait (%p1243_p0), %s258_s19, 256  }
  0x78   : > { %847 = vsyncadd (%p1243_p0), %s258_s19, 4294967040  ;;  %s266_s1 = sand.u32 1, %s946_s21   ;;  %s577_s8 = sshll.u32 %s1103_s25, 6 }
  0x79   : > { %s267_s22 = scalar_lea.sflag [#allocation6], %s266_s1  ;;  %s270_s24 = scalar_lea.vmem [#allocation5], %s577_s8 }
  0x7a   : > { %849 = dma.done.wait (%p1243_p0), %s267_s22, 1280  }
  0x7b   : > { %851 = vsyncadd (%p1243_p0), %s267_s22, 4294966016  ;;  %v330_v0 = vld [vmem:[%s270_s24] sm:$0xff]  ;;  %v332_v1 = vld [vmem:[%s270_s24 + $0x10] sm:$0xff]  ;;  %s279_s9 = scalar_lea.vmem [#allocation7], %s1106_s17  ;;  %v887_v10 = vmov 0.0   ;;  %s594_s21 = sshll.u32 %s874_s18, 8 }
  0x7c   : > { %v336_v2 = vld [vmem:[%s270_s24 + $0x20] sm:$0xff]  ;;  %v334_v3 = vadd.f32 %v332_v1, %v330_v0  ;;  %v340_v4 = vld [vmem:[%s270_s24 + $0x30] sm:$0xff]  ;;  %v331_v6 = vld [vmem:[%s270_s24 + $0x8] sm:$0xff]  ;;  %s318_s27 = scalar_lea.vmem [#allocation9], %s1106_s17  ;;  %s1132_s10 = scalar_lea.hbm %s1217_s4, %s594_s21 }
  0x7d   : > { %v348_v5 = vld [vmem:[%s279_s9] sm:$0xff]  ;;  %v333_v7 = vld [vmem:[%s270_s24 + $0x18] sm:$0xff]  ;;  %v337_v8 = vld [vmem:[%s270_s24 + $0x28] sm:$0xff]  ;;  %s406_s7 = sshll.u32 %s318_s27, 4  ;;  %s378_s26 = scalar_lea.sflag [#allocation10], %s1103_s25  ;;  %s1134_s7 = int_to_ptr.vmem [resolvable:$true] %s406_s7 }
  0x7e   : > { %vm350_vm0 = vcmp.eq.f32.partialorder %v348_v5, 1.0  ;;  %v338_v9 = vadd.f32 %v336_v2, %v334_v3  ;;  %v335_v12 = vadd.f32 %v333_v7, %v331_v6  ;;  %v349_v13 = vld [vmem:[%s279_s9 + $0x8] sm:$0xff]  ;;  %v344_v14 = vld [vmem:[%s261_s29] sm:$0xff]  ;;  %s764_s14 = scalar_lea.vmem %s1134_s7, 256  ;;  %p1244_p10 = scmp.ne.s32.totalorder %s1231_s28, 0 }
  0x7f   : > { %v581_v11 = vsel %vm350_vm0, 1.0, %v887_v10  ;;  %v341_v15 = vld [vmem:[%s270_s24 + $0x38] sm:$0xff]  ;;  %vm351_vm1 = vcmp.eq.f32.partialorder %v349_v13, 1.0  ;;  %p765_p4 = scmp.ne.s32.totalorder %s1134_s7, %s764_s14  ;;  %s888_s23 = smov [#allocation9]  }
  0x80   : > { %v342_v16 = vadd.f32 %v340_v4, %v338_v9  ;;  %v339_v17 = vadd.f32 %v337_v8, %v335_v12  ;;  %v582_v18 = vsel %vm351_vm1, 1.0, %v887_v10  ;;  %v345_v19 = vld [vmem:[%s261_s29 + $0x8] sm:$0xff]  ;;  %370 = vst [vmem:[%s318_s27] sm:$0xff] %v581_v11  ;;  %s768_s5 = sshll.u32 %s888_s23, 4  ;;  %s769_s5 = int_to_ptr.vmem [resolvable:$false] %s768_s5 }
  0x81   : > { %371 = vst [vmem:[%s318_s27 + $0x8] sm:$0xff] %v582_v18  ;;  %p766_p12 = pnand %p765_p4, %p1244_p10  ;;  %s770_s13 = scalar_lea.vmem %s769_s5, 512 }
  0x82   : > { %v346_v20 = vsub.f32 %v344_v14, %v342_v16  ;;  %v343_v21 = vadd.f32 %v341_v15, %v339_v17  ;;  %p771_p8 = scmp.lt.s32.totalorder %s1134_s7, %s769_s5  ;;  %p772_p9 = scmp.lt.s32.totalorder %s770_s13, %s764_s14 }
  0x83   : > { %p767_p1 = pneg %p766_p12 }
  0x84   : > { %v356_v22 = vmul.f32 %v346_v20, %v346_v20  ;;  %v347_v23 = vsub.f32 %v345_v19, %v343_v21  ;;  %p773_p6 = por %p772_p9, %p771_p8 }
  0x86   : > { %p774_p13 = pnand %p773_p6, %p767_p1 }
  0x88   : > { %777 = shalt.err (!%p774_p13)
}
  0x89   : > { %s778_s12 = scalar_lea.hbm %s1132_s10, 256  ;;  %s782_s1 = scalar_lea.hbm %s1217_s4, 512 }
  0x8a   : > { %p779_p11 = scmp.ne.s32.totalorder %s1132_s10, %s778_s12  ;;  %p783_p7 = scmp.lt.u32.totalorder %s1132_s10, %s1217_s4 }
  0x8b   : > { %p784_p3 = scmp.lt.u32.totalorder %s782_s1, %s778_s12  ;;  %p786_p4 = scmp.lt.u32.totalorder %s778_s12, %s1132_s10 }
  0x8c   : > { %p780_p2 = pnand %p779_p11, %p1244_p10 }
  0x8d   : > { %p785_p0 = por %p784_p3, %p783_p7 }
  0x8e   : > { %p781_p5 = pneg %p780_p2 }
  0x8f   : > { %p787_p12 = por %p786_p4, %p785_p0 }
  0x91   : > { %p788_p1 = pnand %p787_p12, %p781_p5 }
  0x93   : > { %791 = shalt.err (!%p788_p1)
}
  0x94   : > { %603 = dma.vmem_to_hbm [thread:$0]  (%p1244_p10), %s1134_s7, 256, %s1132_s10, %s378_s26   ;;  %v358_v24 = vmul.f32 %v581_v11, %v356_v22  ;;  %v357_v25 = vmul.f32 %v347_v23, %v347_v23 }
  0x95   : > { %s311_s24 = scalar_lea.vmem [#allocation8], %s1106_s17  ;;  %s1164_s6 = scalar_lea.hbm %s1216_s3, %s594_s21 }
  0x96   : > { %s392_s9 = sshll.u32 %s311_s24, 4  ;;  %v359_v26 = vmul.f32 %v582_v18, %v357_v25  ;;  %364 = vst [vmem:[%s311_s24] sm:$0xff] %v358_v24  ;;  %s373_s14 = scalar_lea.sflag [#allocation4], %s1103_s25  ;;  %s1166_s9 = int_to_ptr.vmem [resolvable:$true] %s392_s9 }
  0x97   : > { %s792_s7 = scalar_lea.vmem %s1166_s9, 256  ;;  %s889_s17 = smov [#allocation8]  }
  0x98   : > { %365 = vst [vmem:[%s311_s24 + $0x8] sm:$0xff] %v359_v26  ;;  %p793_p8 = scmp.ne.s32.totalorder %s1166_s9, %s792_s7  ;;  %s796_s10 = sshll.u32 %s889_s17, 4  ;;  %s797_s10 = int_to_ptr.vmem [resolvable:$false] %s796_s10 }
  0x99   : > { %s798_s18 = scalar_lea.vmem %s797_s10, 512  ;;  %p799_p13 = scmp.lt.s32.totalorder %s1166_s9, %s797_s10 }
  0x9a   : > { %p794_p9 = pnand %p793_p8, %p1244_p10  ;;  %p800_p11 = scmp.lt.s32.totalorder %s798_s18, %s792_s7 }
  0x9c   : > { %p795_p6 = pneg %p794_p9  ;;  %p801_p2 = por %p800_p11, %p799_p13 }
  0x9e   : > { %p802_p5 = pnand %p801_p2, %p795_p6 }
  0xa0   : > { %805 = shalt.err (!%p802_p5)
}
  0xa1   : > { %s806_s25 = scalar_lea.hbm %s1164_s6, 256  ;;  %s810_s23 = scalar_lea.hbm %s1216_s3, 512 }
  0xa2   : > { %p807_p7 = scmp.ne.s32.totalorder %s1164_s6, %s806_s25  ;;  %p811_p4 = scmp.lt.u32.totalorder %s1164_s6, %s1216_s3 }
  0xa3   : > { %p812_p12 = scmp.lt.u32.totalorder %s810_s23, %s806_s25  ;;  %p814_p8 = scmp.lt.u32.totalorder %s806_s25, %s1164_s6 }
  0xa4   : > { %p808_p3 = pnand %p807_p7, %p1244_p10 }
  0xa5   : > { %p813_p1 = por %p812_p12, %p811_p4 }
  0xa6   : > { %p809_p0 = pneg %p808_p3 }
  0xa7   : > { %p815_p9 = por %p814_p8, %p813_p1 }
  0xa9   : > { %p816_p6 = pnand %p815_p9, %p809_p0 }
  0xab   : > { %819 = shalt.err (!%p816_p6)
}
  0xac   : > { %602 = dma.vmem_to_hbm [thread:$0]  (%p1244_p10), %s1166_s9, 256, %s1164_s6, %s373_s14  }
  0xad PF: > { %s418_s12 = sand.u32 1, %s862_s15   ;;  %p1245_p13 = scmp.ne.s32.totalorder %s1233_s30, 0 }
  0xae   : > { %p1246_p11 = scmp.ge.s32.totalorder %s882_s20, 2  ;;  %s419_s19 = scalar_lea.sflag [#allocation4], %s418_s12 }
  0xb0   : > { %p617_p2 = pnand %p1246_p11, %p1245_p13 }
  0xb2   : > { %853 = dma.done.wait (!%p617_p2), %s419_s19, 256  }
  0xb3   : > { %855 = vsyncadd (!%p617_p2), %s419_s19, 4294967040  ;;  %s428_s29 = scalar_lea.sflag [#allocation10], %s418_s12 }
  0xb4   : > { %857 = dma.done.wait (!%p617_p2), %s428_s29, 256  }
  0xb5   : > { %859 = vsyncadd (!%p617_p2), %s428_s29, 4294967040  ;;  %s27_s20 = sadd.s32 1, %s882_s20   ;;  %s1247_s28 = sld [smem:[#allocation15_spill]] }
  0xb6   : > { %p24_p5 = scmp.ge.s32.totalorder %s27_s20, 4   ;;  %s1248_s17 = sld [smem:[#allocation18_spill]] }
  0xb7   : > { %s1249_s18 = sld [smem:[#allocation16_spill]]  ;;  %s1250_s19 = sld [smem:[#allocation17_spill]] }
  0xb8   : > { %s1251_s15 = smov %s866_s16  ;;  %26 = sbr.rel (!%p24_p5) target bundleno = 12 (0xc), region = 122 }
  0xbb   : > { %s1252_s16 = smov %s1247_s28 }
  0xbf   :  { %433 = vsyncpa [#allocation3], 1 }
  0xc0   :  { %435 = vsyncpa [#allocation3 + $0x1], 1 }
  0xc1   :  { %436 = vsyncpa [#allocation6], 1 }
  0xc2   :  { %438 = vsyncpa [#allocation6 + $0x1], 1 }
  0xc3   :  { %439 = vsyncpa [#allocation4], 1 }
  0xc4   :  { %441 = vsyncpa [#allocation4 + $0x1], 1 }
  0xc5   :  { %442 = vsyncpa [#allocation10], 1 }
  0xc6   :  { %444 = vsyncpa [#allocation10 + $0x1], 1 }

</bundles_post_ra>
